<compile_context>
chip_gen: v5e
topology: v5e:2x2
jax: 0.10.0
libtpu: 0.0.40
codegen_flags: <defaults>
</compile_context>

<pallas_src>
import jax
import jax.numpy as jnp
from jax.experimental import pallas as pl
from jax.experimental.pallas import tpu as pltpu


_NEG_SLOPE = 0.2
_LANE_CAP = 8192          # max lane width per tile (multiple of 128)
_MIN_STEPS = 4            # target grid depth for pipelining / megacore
_XLA_FALLBACK_BYTES = 64 * 1024  # below this a standalone pallas_call isn't worth it


def _mapping_proxy_kernel(x_ref, mean_ref, std_ref, o_ref):
    # x_ref / o_ref: (TB, TL); mean_ref / std_ref: (1, TL) or (TB, TL).
    y = std_ref[...] * x_ref[...] + mean_ref[...]
    # LeakyReLU(0.2): for slope < 1 this is exactly max(y, slope*y).
    o_ref[...] = jnp.maximum(y, _NEG_SLOPE * y)


def _budgets():
    """Per-tile byte budget and scoped-VMEM limit, derived from chip VMEM size."""
    try:
        vmem_cap = pltpu.get_tpu_info().vmem_capacity_bytes
    except Exception:  # be conservative if the query is unavailable
        vmem_cap = 64 * 1024 * 1024
    if vmem_cap >= 100 * 1024 * 1024:     # v5e / v6e: 128 MiB physical VMEM
        return 6 * 1024 * 1024, 64 * 1024 * 1024
    # v7x (64 MiB per TC) or unknown: keep tiles <= 4 MiB, scoped limit <= 32 MiB.
    return 4 * 1024 * 1024, 32 * 1024 * 1024


def _divisor_tiles(n, unit, cap):
    """Divisors of n that are multiples of `unit` and <= cap, descending."""
    out = []
    d = (cap // unit) * unit
    while d >= unit:
        if n % d == 0:
            out.append(d)
        d -= unit
    return out


def _pick_tiles_flat(R, L, itemsize, tile_bytes):
    """Row/lane tiles for the (B, S*H) layout."""
    # Lane tile: full extent if small enough, else a large dividing multiple of 128.
    if L <= _LANE_CAP:
        tl = L
    else:
        divs = _divisor_tiles(L, 128, _LANE_CAP)
        tl = divs[0] if divs else (_LANE_CAP // 128) * 128
    # Row tile from the per-tile byte budget.
    rows_budget = max(8, tile_bytes // max(1, tl * itemsize))
    tb = R if R <= rows_budget else max(8, (rows_budget // 8) * 8)

    # Guarantee a minimum grid depth when the problem spans more than ~2 tiles.
    total_bytes = R * L * itemsize
    if total_bytes > 2 * tile_bytes:
        def nsteps(tb_, tl_):
            return pl.cdiv(R, tb_) * pl.cdiv(L, tl_)
        # Prefer shrinking rows (keeps mean/std fetched once per lane block).
        while nsteps(tb, tl) < _MIN_STEPS and tb > 8:
            tb = max(8, ((tb // 2) // 8) * 8)
        while nsteps(tb, tl) < _MIN_STEPS and tl > 128:
            divs = _divisor_tiles(L, 128, max(128, tl // 2))
            new_tl = divs[0] if divs else max(128, ((tl // 2) // 128) * 128)
            if new_tl >= tl:
                break
            tl = new_tl
    return tb, tl


def mapping_proxy_forward(x, mean, std, *, force_pallas=False):
    """x: (B, S, H); mean/std: (S, H). Returns LeakyReLU(0.2)(std * x + mean)."""
    B, S, H = x.shape
    assert mean.shape == (S, H) and std.shape == (S, H)
    itemsize = x.dtype.itemsize
    total_bytes = B * S * H * itemsize

    # Tiny-problem fallback: a standalone pallas_call has fixed launch overhead
    # and blocks XLA fusion; a plain elementwise expression is strictly faster.
    if not force_pallas and total_bytes < _XLA_FALLBACK_BYTES:
        y = std[None] * x + mean[None]
        return jnp.maximum(y, _NEG_SLOPE * y)

    tile_bytes, vmem_limit = _budgets()

    # Small-batch path: fold S into the row dimension so tiles are sublane-dense.
    use_rowfold = (B < 8) and (S % 8 == 0) and (H % 128 == 0)

    if use_rowfold:
        R, L = B * S, H
        x2 = x.reshape(R, L)
        m2, s2 = mean, std

        if L <= _LANE_CAP:
            tl = L
        else:
            divs = _divisor_tiles(L, 128, _LANE_CAP)
            tl = divs[0] if divs else (_LANE_CAP // 128) * 128
        lane_blocks = pl.cdiv(L, tl)

        rows_budget = max(8, tile_bytes // max(1, tl * itemsize))
        cands = _divisor_tiles(S, 8, min(S, rows_budget)) or [8]
        tb = cands[0]
        if total_bytes > 2 * tile_bytes:
            for d in cands:  # descending: largest tile that still gives enough steps
                if (R // d) * lane_blocks >= _MIN_STEPS:
                    tb = d
                    break
            else:
                tb = cands[-1]

        n_s_blocks = S // tb  # tb divides S => exact per-(s,h) alignment
        mean_block = (tb, tl)
        mean_index_map = lambda j, i: (i % n_s_blocks, j)
    else:
        R, L = B, S * H
        x2 = x.reshape(R, L)
        m2 = mean.reshape(1, L)
        s2 = std.reshape(1, L)
        tb, tl = _pick_tiles_flat(R, L, itemsize, tile_bytes)
        mean_block = (1, tl)
        mean_index_map = lambda j, i: (0, j)

    # Lane-block axis OUTER, row-block axis INNER: mean/std block index is
    # constant across consecutive inner steps, so Pallas skips their re-DMA.
    grid = (pl.cdiv(L, tl), pl.cdiv(R, tb))

    cost = pl.CostEstimate(
        flops=4 * R * L,
        transcendentals=0,
        bytes_accessed=2 * R * L * itemsize + 2 * S * H * itemsize,
    )

    out2 = pl.pallas_call(
        _mapping_proxy_kernel,
        out_shape=jax.ShapeDtypeStruct((R, L), x.dtype),
        grid_spec=pltpu.PrefetchScalarGridSpec(
            num_scalar_prefetch=0,
            grid=grid,
            in_specs=[
                pl.BlockSpec((tb, tl), lambda j, i: (i, j)),  # x tile
                pl.BlockSpec(mean_block, mean_index_map),     # mean
                pl.BlockSpec(mean_block, mean_index_map),     # std
            ],
            out_specs=pl.BlockSpec((tb, tl), lambda j, i: (i, j)),
        ),
        compiler_params=pltpu.CompilerParams(
            dimension_semantics=("parallel", "parallel"),
            vmem_limit_bytes=vmem_limit,
        ),
        cost_estimate=cost,
    )(x2, m2, s2)

    return out2.reshape(B, S, H)


if __name__ == "__main__":
    key = jax.random.PRNGKey(0)
    kx, km, ks, kx2 = jax.random.split(key, 4)

    # Deterministic synthetic "gaussian_ft" parameters (not loaded from disk).
    S, H = 8, 128
    mean = jax.random.normal(km, (S, H), dtype=jnp.float32)
    std = jax.nn.softplus(jax.random.normal(ks, (S, H), dtype=jnp.float32)) + 0.1

    def ref_fn(x):
        return jax.nn.leaky_relu(std[None] * x + mean[None], negative_slope=0.2)

    # Case 1: small batch (B < 8) -> row-folded (B*S, H) path.
    x_small = jax.random.normal(kx, (2, S, H), dtype=jnp.float32)
    out_small = jax.block_until_ready(
        mapping_proxy_forward(x_small, mean, std, force_pallas=True))
    assert jnp.allclose(out_small, ref_fn(x_small), atol=1e-6, rtol=1e-6), \
        "mismatch vs reference (small-batch path)"

    # Case 2: batch >= 8 -> lane-dense (B, S*H) path.
    x_big = jax.random.normal(kx2, (16, S, H), dtype=jnp.float32)
    out_big = jax.block_until_ready(
        mapping_proxy_forward(x_big, mean, std, force_pallas=True))
    assert jnp.allclose(out_big, ref_fn(x_big), atol=1e-6, rtol=1e-6), \
        "mismatch vs reference (batched path)"

    print("KERNEL_OK")
</pallas_src>

<mosaic_0001>
module attributes {stable_mosaic.version = 11 : i64} {
  func.func @_mapping_proxy_kernel(%arg0: i32, %arg1: i32, %arg2: memref<8x128xf32, #tpu.memory_space<vmem>>, %arg3: memref<8x128xf32, #tpu.memory_space<vmem>>, %arg4: memref<8x128xf32, #tpu.memory_space<vmem>>, %arg5: memref<8x128xf32, #tpu.memory_space<vmem>>) attributes {dimension_semantics = [#tpu.dimension_semantics<parallel>, #tpu.dimension_semantics<parallel>], iteration_bounds = array<i64: 1, 2>, scalar_prefetch = 0 : i64, scratch_operands = 0 : i64, tpu.core_type = #tpu.core_type<tc>, window_params = [{transform_indices = @transform_0, window_bounds = array<i64: 8, 128>}, {transform_indices = @transform_1, window_bounds = array<i64: 8, 128>}, {transform_indices = @transform_2, window_bounds = array<i64: 8, 128>}, {transform_indices = @transform_3, window_bounds = array<i64: 8, 128>}]} {
    %c0 = arith.constant 0 : index
    %c0_0 = arith.constant 0 : index
    %0 = vector.load %arg4[%c0, %c0_0] : memref<8x128xf32, #tpu.memory_space<vmem>>, vector<8x128xf32>
    %c0_1 = arith.constant 0 : index
    %c0_2 = arith.constant 0 : index
    %1 = vector.load %arg2[%c0_1, %c0_2] : memref<8x128xf32, #tpu.memory_space<vmem>>, vector<8x128xf32>
    %2 = arith.mulf %0, %1 : vector<8x128xf32>
    %c0_3 = arith.constant 0 : index
    %c0_4 = arith.constant 0 : index
    %3 = vector.load %arg3[%c0_3, %c0_4] : memref<8x128xf32, #tpu.memory_space<vmem>>, vector<8x128xf32>
    %4 = arith.addf %2, %3 : vector<8x128xf32>
    %cst = arith.constant 2.000000e-01 : f32
    %5 = vector.broadcast %cst : f32 to vector<8x128xf32>
    %6 = arith.mulf %5, %4 : vector<8x128xf32>
    %7 = arith.maximumf %4, %6 : vector<8x128xf32>
    %c0_5 = arith.constant 0 : index
    %c0_6 = arith.constant 0 : index
    %8 = vector.load %arg5[%c0_5, %c0_6] : memref<8x128xf32, #tpu.memory_space<vmem>>, vector<8x128xf32>
    tpu.vector_store %arg5[%c0_5, %c0_6], %7 {strides = array<i32>} : memref<8x128xf32, #tpu.memory_space<vmem>>, vector<8x128xf32>,
    return
  }
  func.func @transform_0(%arg0: i32, %arg1: i32) -> (i32, i32) {
    %c0_i32 = arith.constant 0 : i32
    return %arg1, %arg0 : i32, i32
  }
  func.func @transform_1(%arg0: i32, %arg1: i32) -> (i32, i32) {
    %c1_i32 = arith.constant 1 : i32
    %c0_i32 = arith.constant 0 : i32
    %0 = arith.cmpi eq, %c1_i32, %c0_i32 : i32
    %c1_i32_0 = arith.constant 1 : i32
    %1 = arith.select %0, %c1_i32_0, %c1_i32 : i32
    %2 = arith.remsi %arg1, %1 : i32
    %c0_i32_1 = arith.constant 0 : i32
    %3 = arith.cmpi ne, %2, %c0_i32_1 : i32
    %c0_i32_2 = arith.constant 0 : i32
    %4 = arith.cmpi slt, %2, %c0_i32_2 : i32
    %c0_i32_3 = arith.constant 0 : i32
    %5 = arith.cmpi slt, %1, %c0_i32_3 : i32
    %6 = arith.xori %4, %5 : i1
    %7 = arith.andi %6, %3 : i1
    %8 = arith.addi %2, %1 : i32
    %9 = arith.select %7, %8, %2 : i32
    %c0_i32_4 = arith.constant 0 : i32
    return %9, %arg0 : i32, i32
  }
  func.func @transform_2(%arg0: i32, %arg1: i32) -> (i32, i32) {
    %c1_i32 = arith.constant 1 : i32
    %c0_i32 = arith.constant 0 : i32
    %0 = arith.cmpi eq, %c1_i32, %c0_i32 : i32
    %c1_i32_0 = arith.constant 1 : i32
    %1 = arith.select %0, %c1_i32_0, %c1_i32 : i32
    %2 = arith.remsi %arg1, %1 : i32
    %c0_i32_1 = arith.constant 0 : i32
    %3 = arith.cmpi ne, %2, %c0_i32_1 : i32
    %c0_i32_2 = arith.constant 0 : i32
    %4 = arith.cmpi slt, %2, %c0_i32_2 : i32
    %c0_i32_3 = arith.constant 0 : i32
    %5 = arith.cmpi slt, %1, %c0_i32_3 : i32
    %6 = arith.xori %4, %5 : i1
    %7 = arith.andi %6, %3 : i1
    %8 = arith.addi %2, %1 : i32
    %9 = arith.select %7, %8, %2 : i32
    %c0_i32_4 = arith.constant 0 : i32
    return %9, %arg0 : i32, i32
  }
  func.func @transform_3(%arg0: i32, %arg1: i32) -> (i32, i32) {
    %c0_i32 = arith.constant 0 : i32
    return %arg1, %arg0 : i32, i32
  }
}

</mosaic_0001>

<bundles_post_ra>
// kernel: tpu_custom_call.1
= control target key start
LH: loop header
LB: loop body
LE: loop exit
PB: predicated region body
PF: predicated region fallthrough
CT: control target
= control target key end

     0   :  { %8 = vsyncpa [#allocation3], 0  ;;  %s818_s0 = inlined_call_operand.hbm [shape: f32[16,128], index: 0, kind: input, shape index: {}]   ;;  %s819_s1 = inlined_call_operand.hbm [shape: f32[8,128], index: 1, kind: input, shape index: {}]   ;;  %s820_s2 = inlined_call_operand.hbm [shape: f32[8,128], index: 2, kind: input, shape index: {}]   ;;  %s821_s3 = inlined_call_operand.hbm [shape: f32[16,128], index: 3, kind: output, shape index: {}]  }
   0x1   :  { %10 = vsyncpa [#allocation3 + $0x1], 0 }
   0x2   :  { %11 = vsyncpa [#allocation6], 0 }
   0x3   :  { %12 = vsyncpa [#allocation4], 0 }
   0x4   :  { %14 = vsyncpa [#allocation4 + $0x1], 0  ;;  %s676_s12 = smov 0   ;;  %s678_s13 = smov 0  }
   0x5   :  { %s680_s14 = smov 0   ;;  %s682_s15 = smov 0  }
   0x6   :  { %s684_s16 = smov 0   ;;  %s686_s17 = smov 0  }
   0x7 LB: > { %s376_s18 = sadd.s32 4294967295, %s652_s17   ;;  %s377_s19 = sadd.s32 4294967294, %s652_s17   ;;  %s652_s17 = sphi %s686_s17, %s20_s17   ;;  %s648_s16 = sphi %s684_s16, %s831_s16   ;;  %s644_s15 = sphi %s682_s15, %s830_s15   ;;  %s640_s14 = sphi %s680_s14, %s829_s14   ;;  %s636_s13 = sphi %s678_s13, %s828_s13   ;;  %s632_s12 = sphi %s676_s12, %s827_s12  }
   0x8   : > { %p54_p0 = scmp.ne.s32.totalorder %s636_s13, %s632_s12  ;;  %p710_p1 = scmp.eq.s32.totalorder %s376_s18, 0 }
   0x9   : > { %p138_p2 = scmp.eq.s32.totalorder %s377_s19, 1  ;;  %p378_p4 = scmp.ge.s32.totalorder %s652_s17, 1 }
   0xa   : > { %p716_p3 = por %p710_p1, %p54_p0  ;;  %p145_p6 = scmp.lt.s32.totalorder %s652_s17, 3 }
   0xb   : > { %p721_p5 = por %p138_p2, %p54_p0  ;;  %s159_s25 = sshll.u32 %s819_s1, 4  ;;  %s160_s25 = int_to_ptr.hbm [resolvable:$true] %s159_s25 }
   0xc   : > { %p729_p7 = pnand %p378_p4, %p145_p6  ;;  %p381_p8 = scmp.ge.s32.totalorder %s652_s17, 2 }
   0xd   : > { %s654_s27 = smov [#allocation5]   ;;  %s173_s4 = sshll.u32 %s820_s2, 4  ;;  %s174_s4 = int_to_ptr.hbm [resolvable:$true] %s173_s4 }
   0xe   : > { %p405_p9 = pneg %p729_p7  ;;  %s161_s28 = sshll.u32 %s654_s27, 4  ;;  %s162_s28 = int_to_ptr.vmem [resolvable:$true] %s161_s28 }
   0xf   : > { %s655_s5 = smov [#allocation7]   ;;  %p132_p11 = scmp.eq.s32.totalorder %s376_s18, 1 }
  0x10   : > { %p406_p10 = pnand %p405_p9, %p710_p1  ;;  %s175_s6 = sshll.u32 %s655_s5, 4  ;;  %s176_s6 = int_to_ptr.vmem [resolvable:$true] %s175_s6 }
  0x11   : > { %s29_s7 = sadd.s32 1, %s648_s16  ;;  %s41_s8 = sadd.s32 1, %s640_s14 }
  0x12   : > { %408 = dma.hbm_to_vmem [thread:$0]  (!%p406_p10), %s160_s25, 128, %s162_s28, [#allocation6]  }
  0x13   : > { %411 = dma.hbm_to_vmem [thread:$0]  (!%p406_p10), %s174_s4, 128, %s176_s6, [#allocation6]  }
  0x14   : > { %p30_p12 = scmp.ge.s32.totalorder %s29_s7, 2  ;;  %p48_p13 = scmp.ne.s32.totalorder %s640_s14, %s636_s13 }
  0x15   : > { %p49_p0 = scmp.eq.s32.totalorder %s652_s17, 0  ;;  %p422_p4 = scmp.lt.s32.totalorder %s652_s17, 2 }
  0x16   : > { %s833_s7 = smov (%p30_p12, %s29_s7), 0  ;;  %p748_p2 = por %p132_p11, %p48_p13 }
  0x17   : > { %s36_s10 = ssub.s32 %s648_s16, %s833_s7  ;;  %s186_s11 = sand.u32 1, %s640_s14  }
  0x18   : > { %p39_p6 = scmp.eq.s32.totalorder %s36_s10, 0  ;;  %p50_p9 = por %p49_p0, %p48_p13 }
  0x19   : > { %s382_s19 = sshll.u32 %s186_s11, 3  ;;  %s383_s18 = sshll.u32 %s648_s16, 3 }
  0x1a   : > { %s758_s23 = scalar_select %p39_p6, %s640_s14, %s41_s8  }
  0x1b   : > { %s195_s27 = scalar_lea.hbm %s818_s0, %s383_s18  ;;  %s190_s29 = scalar_lea.vmem [#allocation2], %s382_s19 }
  0x1c   : > { %s197_s28 = sshll.u32 %s195_s27, 4  ;;  %s199_s30 = sshll.u32 %s190_s29, 4  ;;  %s198_s28 = int_to_ptr.hbm [resolvable:$true] %s197_s28  ;;  %s200_s30 = int_to_ptr.vmem [resolvable:$true] %s199_s30 }
  0x1d   : > { %p413_p10 = pnand %p422_p4, %p50_p9  ;;  %s187_s4 = scalar_lea.sflag [#allocation3], %s186_s11 }
  0x1e   : > { %208 = sbr.rel (%p729_p7) target bundleno = 53 (0x35), region = 32  ;;  %s768_s5 = sand.u32 (!%p729_p7), 1, %s636_s13  }
  0x1f   : > { %415 = dma.hbm_to_vmem [thread:$0]  (!%p413_p10), %s198_s28, 128, %s200_s30, %s187_s4  }
  0x20   : > { %s385_s6 = sshll.u32 (!%p729_p7), %s768_s5, 3  ;;  %s211_s8 = scalar_lea.sflag (!%p729_p7), [#allocation3], %s768_s5 }
  0x21   : > { %s214_s10 = scalar_lea.vmem (!%p729_p7), [#allocation2], %s385_s6 }
  0x23   : > { %619 = dma.done.wait (%p716_p3), %s211_s8, 128  }
  0x24   : > { %621 = vsyncadd (%p716_p3), %s211_s8, 4294967168 }
  0x25   : > { %623 = dma.done.wait (%p710_p1), [#allocation6], 256  }
  0x26   : > { %625 = vsyncadd (%p710_p1), [#allocation6], 4294967040  ;;  %s390_s26 = sshll.u32 %s644_s15, 3  ;;  %v248_v0 = vld [vmem:[#allocation7] sm:$0xff]  ;;  %v249_v1 = vld [vmem:[%s214_s10] sm:$0xff]  ;;  %s247_s21 = scalar_lea.vmem [#allocation8], %s385_s6 }
  0x27   : > { %v251_v2 = vld [vmem:[#allocation5] sm:$0xff]  ;;  %v250_v3 = vmul.f32 %v249_v1, %v248_v0  ;;  %s268_s18 = scalar_lea.hbm %s821_s3, %s390_s26  ;;  %s270_s24 = sshll.u32 %s247_s21, 4  ;;  %s271_s24 = int_to_ptr.vmem [resolvable:$true] %s270_s24 }
  0x28   : > { %s272_s25 = sshll.u32 %s268_s18, 4  ;;  %s257_s20 = scalar_lea.sflag [#allocation4], %s768_s5  ;;  %s273_s25 = int_to_ptr.hbm [resolvable:$true] %s272_s25 }
  0x29   : > { %v252_v4 = vadd.f32 %v251_v2, %v250_v3  ;;  %s580_s15 = sshra.s32 %s273_s25, 4  ;;  %s586_s30 = scalar_lea.hbm %s821_s3, 16  ;;  %s581_s15 = int_to_ptr.hbm [resolvable:$true] %s580_s15 }
  0x2a   : > { %s582_s27 = scalar_lea.hbm %s581_s15, 8  ;;  %p587_p11 = scmp.lt.s32.totalorder %s581_s15, %s821_s3 }
  0x2b   : > { %v253_v5 = vmul.f32 0.2, %v252_v4  ;;  %p583_p1 = scmp.ne.s32.totalorder %s581_s15, %s582_s27  ;;  %p588_p12 = scmp.lt.s32.totalorder %s586_s30, %s582_s27 }
  0x2d   : > { %v254_v6 = vmax.f32 %v252_v4, %v253_v5  ;;  %p584_p3 = pnand %p583_p1, %p748_p2  ;;  %p589_p13 = por %p588_p12, %p587_p11 }
  0x2f   : > { %255 = vst [vmem:[%s247_s21] sm:$0xff] %v254_v6  ;;  %p585_p7 = pneg %p584_p3 }
  0x31   : > { %p590_p0 = pnand %p589_p13, %p585_p7 }
  0x33   : > { %593 = shalt.err (!%p590_p0)
}
  0x34   : > { %403 = dma.vmem_to_hbm [thread:$0]  (%p748_p2), %s271_s24, 128, %s273_s25, %s257_s20  }
  0x35 PF: > { %s284_s5 = sand.u32 1, %s632_s12   ;;  %p417_p4 = pnand %p381_p8, %p721_p5 }
  0x36   : > { %s285_s8 = scalar_lea.sflag [#allocation4], %s284_s5 }
  0x37   : > { %p418_p6 = pneg %p417_p4 }
  0x39   : > { %627 = dma.done.wait (%p418_p6), %s285_s8, 128  }
  0x3a   : > { %629 = vsyncadd (%p418_p6), %s285_s8, 4294967168  ;;  %s20_s17 = sadd.s32 1, %s652_s17   ;;  %s827_s12 = smov %s636_s13 }
  0x3b   : > { %p17_p9 = scmp.ge.s32.totalorder %s20_s17, 4   ;;  %s828_s13 = smov %s640_s14 }
  0x3c   : > { %s829_s14 = smov %s758_s23  ;;  %s830_s15 = smov %s648_s16 }
  0x3d   : > { %s831_s16 = smov %s833_s7  ;;  %19 = sbr.rel (!%p17_p9) target bundleno = 7 (0x7), region = 87 }
  0x42   :  { %291 = vsyncpa [#allocation3], 1 }
  0x43   :  { %293 = vsyncpa [#allocation3 + $0x1], 1 }
  0x44   :  { %294 = vsyncpa [#allocation6], 1 }
  0x45   :  { %295 = vsyncpa [#allocation4], 1 }
  0x46   :  { %297 = vsyncpa [#allocation4 + $0x1], 1 }

</bundles_post_ra>
